<compile_context>
chip_gen: v7x
topology: tpu7x:2x2x1
jax: 0.10.0
libtpu: 0.0.40
codegen_flags: <defaults>
</compile_context>

<pallas_src>
import jax
import jax.numpy as jnp
from jax.experimental import pallas as pl
from jax.experimental.pallas import tpu as pltpu

EPS = 1e-5
DROP_P = 0.2
# int() truncates: keep-probability is ~0.800000000047 instead of exactly 0.8
# (negligible).
_DROP_THRESHOLD = int(DROP_P * (1 << 32))


def _mix32(x):
    """32-bit SplitMix/Murmur-style finalizer on uint32 arrays (wraps mod 2^32)."""
    x = x ^ (x >> 16)
    x = x * jnp.uint32(0x7FEB352D)
    x = x ^ (x >> 15)
    x = x * jnp.uint32(0x846CA68B)
    x = x ^ (x >> 16)
    return x


def layer_fc_forward(x, w, b, gamma, beta, seed, *, tn=128, tk=128,
                     out_dtype=jnp.float32, vmem_limit_bytes=48 * 1024 * 1024):
    """Fused Linear+ReLU+BatchNorm1d(train)+Dropout(0.2) forward.

    x:      [N, D_in]  float32 activations
    w:      [D_in, D_out] float32 weights (pre-transposed nn.Linear weight)
    b, gamma, beta: [1, D_out] float32
    seed:   [1] int32 dropout seed
    Returns [N, D_out] `out_dtype`.

    tn/tk: feature / reduction tile sizes. Keep multiples of 128; use 256 on
    v6e/v7x for large layers (matches the 256-wide MXU), 128 on v5e.
    """
    n, d_in = x.shape
    d_out = w.shape[1]

    d_in_p = pl.cdiv(d_in, tk) * tk
    d_out_p = pl.cdiv(d_out, tn) * tn

    # bf16 matmul operands (f32 accumulate in-kernel): big MXU + DMA win.
    x_b = x.astype(jnp.bfloat16)
    w_b = w.astype(jnp.bfloat16)
    b = b.astype(jnp.float32)
    gamma = gamma.astype(jnp.float32)
    beta = beta.astype(jnp.float32)

    if d_in_p != d_in:
        x_b = jnp.pad(x_b, ((0, 0), (0, d_in_p - d_in)))
        w_b = jnp.pad(w_b, ((0, d_in_p - d_in), (0, 0)))
    if d_out_p != d_out:
        pad = d_out_p - d_out
        w_b = jnp.pad(w_b, ((0, 0), (0, pad)))
        b = jnp.pad(b, ((0, 0), (0, pad)))
        gamma = jnp.pad(gamma, ((0, 0), (0, pad)))
        beta = jnp.pad(beta, ((0, 0), (0, pad)))

    n_j = d_out_p // tn   # feature tiles ("parallel")
    n_k = d_in_p // tk    # reduction tiles ("arbitrary", last)
    inv_keep = 1.0 / (1.0 - DROP_P)

    def kernel(seed_ref, x_ref, w_ref, b_ref, g_ref, bt_ref, o_ref, acc_ref):
        # Hoist ALL program_id reads to the top level of the kernel body —
        # never call pl.program_id inside a pl.when branch.
        j = pl.program_id(0)
        k = pl.program_id(1)

        @pl.when(k == 0)
        def _init():
            acc_ref[...] = jnp.zeros_like(acc_ref)

        # MXU: bf16 x bf16 -> f32 accumulate.
        acc_ref[...] += jnp.dot(x_ref[...], w_ref[...],
                                preferred_element_type=jnp.float32)

        @pl.when(k == n_k - 1)
        def _epilogue():
            # Bias + ReLU.
            h = jnp.maximum(acc_ref[...] + b_ref[...], 0.0)

            # BatchNorm1d training-mode batch stats (exact: batch axis untiled;
            # centered-variance form avoids E[h^2]-E[h]^2 cancellation).
            mean = jnp.mean(h, axis=0, keepdims=True)
            cent = h - mean
            var = jnp.mean(cent * cent, axis=0, keepdims=True)
            inv_std = jax.lax.rsqrt(var + EPS)

            # Fold BN affine and the 1/(1-p) dropout scale into one per-feature
            # scale/shift -> single FMA + select per element.
            bn_scale = g_ref[...] * inv_std
            bn_shift = bt_ref[...] - mean * bn_scale
            scale = bn_scale * jnp.float32(inv_keep)
            shift = bn_shift * jnp.float32(inv_keep)

            # Dropout keep-mask: hash of the GLOBAL element index + seed, so the
            # mask is decorrelated across tiles and deterministic in the seed.
            # TODO(synk): cannot bit-match torch's RNG stream; only keep-prob
            # statistics are reproduced.
            rows = jax.lax.broadcasted_iota(jnp.uint32, h.shape, 0)
            cols = jax.lax.broadcasted_iota(jnp.uint32, h.shape, 1)
            cols = cols + (j * tn).astype(jnp.uint32)
            idx = rows * jnp.uint32(d_out_p) + cols
            seed_u = seed_ref[0].astype(jnp.uint32)
            bits = _mix32(idx ^ (seed_u * jnp.uint32(0x9E3779B9)))
            keep = bits >= jnp.uint32(_DROP_THRESHOLD)

            o_ref[...] = jnp.where(keep, h * scale + shift,
                                   jnp.float32(0.0)).astype(o_ref.dtype)

    grid_spec = pltpu.PrefetchScalarGridSpec(
        num_scalar_prefetch=1,                      # seed lands in SMEM
        grid=(n_j, n_k),
        in_specs=[
            pl.BlockSpec((n, tk), lambda j, k, seed: (0, k)),    # x
            pl.BlockSpec((tk, tn), lambda j, k, seed: (k, j)),   # w
            pl.BlockSpec((1, tn), lambda j, k, seed: (0, j)),    # bias
            pl.BlockSpec((1, tn), lambda j, k, seed: (0, j)),    # gamma
            pl.BlockSpec((1, tn), lambda j, k, seed: (0, j)),    # beta
        ],
        out_specs=pl.BlockSpec((n, tn), lambda j, k, seed: (0, j)),
        scratch_shapes=[pltpu.VMEM((n, tn), jnp.float32)],       # f32 accumulator
    )

    out_p = pl.pallas_call(
        kernel,
        out_shape=jax.ShapeDtypeStruct((n, d_out_p), out_dtype),
        grid_spec=grid_spec,
        compiler_params=pltpu.CompilerParams(
            dimension_semantics=("parallel", "arbitrary"),
            vmem_limit_bytes=vmem_limit_bytes,
        ),
    )(seed, x_b, w_b, b, gamma, beta)

    # TODO(synk): BatchNorm1d running_mean/running_var state update is module
    # state, not part of the returned tensor, and is not emitted here.
    return out_p[:, :d_out] if d_out_p != d_out else out_p


def _reference_forward(x, w, b, gamma, beta, seed, d_out_padded):
    """Pure-JAX reference with the identical bf16 matmul + hash dropout mask."""
    n, _ = x.shape
    d_out = w.shape[1]
    h = jnp.dot(x.astype(jnp.bfloat16), w.astype(jnp.bfloat16),
                preferred_element_type=jnp.float32) + b
    h = jnp.maximum(h, 0.0)
    mean = jnp.mean(h, axis=0, keepdims=True)
    var = jnp.mean((h - mean) ** 2, axis=0, keepdims=True)
    h = (h - mean) * jax.lax.rsqrt(var + EPS) * gamma + beta

    rows = jax.lax.broadcasted_iota(jnp.uint32, (n, d_out_padded), 0)
    cols = jax.lax.broadcasted_iota(jnp.uint32, (n, d_out_padded), 1)
    idx = rows * jnp.uint32(d_out_padded) + cols
    seed_u = seed[0].astype(jnp.uint32)
    bits = _mix32(idx ^ (seed_u * jnp.uint32(0x9E3779B9)))
    keep = (bits >= jnp.uint32(_DROP_THRESHOLD))[:, :d_out]
    return jnp.where(keep, h / (1.0 - DROP_P), 0.0)


if __name__ == "__main__":
    # Small shapes consistent with the module ([batch, input_dim] -> [batch, output_dim]),
    # chosen lane/tile aligned so the demo exercises a real (2, 2) grid.
    N, D_IN, D_OUT = 8, 256, 256
    TN, TK = 128, 128

    key = jax.random.PRNGKey(0)
    kx, kw, kb = jax.random.split(key, 3)

    x = jax.random.normal(kx, (N, D_IN), dtype=jnp.float32)

    # Deterministic nn.Linear-style init; weight stored pre-transposed [D_in, D_out].
    bound = 1.0 / (D_IN ** 0.5)
    w = jax.random.uniform(kw, (D_IN, D_OUT), minval=-bound, maxval=bound,
                           dtype=jnp.float32)
    b = jax.random.uniform(kb, (1, D_OUT), minval=-bound, maxval=bound,
                           dtype=jnp.float32)
    gamma = jnp.ones((1, D_OUT), dtype=jnp.float32)   # BatchNorm1d weight
    beta = jnp.zeros((1, D_OUT), dtype=jnp.float32)   # BatchNorm1d bias
    seed = jnp.array([1234], dtype=jnp.int32)

    out = layer_fc_forward(x, w, b, gamma, beta, seed, tn=TN, tk=TK)
    jax.block_until_ready(out)

    assert out.shape == (N, D_OUT) and out.dtype == jnp.float32

    # Sanity check against a pure-JAX reference (same bf16 matmul + same mask).
    d_out_p = pl.cdiv(D_OUT, TN) * TN
    ref = _reference_forward(x, w, b, gamma, beta, seed, d_out_p)
    assert jnp.allclose(out, ref, atol=2e-2, rtol=2e-2), \
        float(jnp.max(jnp.abs(out - ref)))

    print("KERNEL_OK")
</pallas_src>

<mosaic_0001>
module attributes {stable_mosaic.version = 11 : i64} {
  func.func @kernel(%arg0: i32, %arg1: i32, %arg2: memref<1xi32, #tpu.memory_space<smem>>, %arg3: memref<8x128xbf16, #tpu.memory_space<vmem>>, %arg4: memref<128x128xbf16, #tpu.memory_space<vmem>>, %arg5: memref<1x128xf32, #tpu.memory_space<vmem>>, %arg6: memref<1x128xf32, #tpu.memory_space<vmem>>, %arg7: memref<1x128xf32, #tpu.memory_space<vmem>>, %arg8: memref<8x128xf32, #tpu.memory_space<vmem>>, %arg9: memref<8x128xf32, #tpu.memory_space<vmem>>) attributes {dimension_semantics = [#tpu.dimension_semantics<parallel>, #tpu.dimension_semantics<arbitrary>], iteration_bounds = array<i64: 2, 2>, scalar_prefetch = 1 : i64, scratch_operands = 1 : i64, tpu.core_type = #tpu.core_type<tc>, window_params = [{transform_indices = @transform_0, window_bounds = array<i64: 8, 128>}, {transform_indices = @transform_1, window_bounds = array<i64: 128, 128>}, {transform_indices = @transform_2, window_bounds = array<i64: 1, 128>}, {transform_indices = @transform_3, window_bounds = array<i64: 1, 128>}, {transform_indices = @transform_4, window_bounds = array<i64: 1, 128>}, {transform_indices = @transform_5, window_bounds = array<i64: 8, 128>}]} {
    %c0_i32 = arith.constant 0 : i32
    %0 = arith.cmpi eq, %arg1, %c0_i32 : i32
    %1 = arith.extui %0 : i1 to i32
    %c0_i32_0 = arith.constant 0 : i32
    %2 = arith.cmpi ne, %1, %c0_i32_0 : i32
    scf.if %2 {
      %cst_9 = arith.constant 0.000000e+00 : f32
      %12 = vector.broadcast %cst_9 : f32 to vector<8x128xf32>
      %c0_10 = arith.constant 0 : index
      %c0_11 = arith.constant 0 : index
      %13 = vector.load %arg9[%c0_10, %c0_11] : memref<8x128xf32, #tpu.memory_space<vmem>>, vector<8x128xf32>
      tpu.vector_store %arg9[%c0_10, %c0_11], %12 {strides = array<i32>} : memref<8x128xf32, #tpu.memory_space<vmem>>, vector<8x128xf32>,
    } else {
    }
    %c0 = arith.constant 0 : index
    %c0_1 = arith.constant 0 : index
    %3 = vector.load %arg9[%c0, %c0_1] : memref<8x128xf32, #tpu.memory_space<vmem>>, vector<8x128xf32>
    %c0_2 = arith.constant 0 : index
    %c0_3 = arith.constant 0 : index
    %4 = vector.load %arg3[%c0_2, %c0_3] : memref<8x128xbf16, #tpu.memory_space<vmem>>, vector<8x128xbf16>
    %c0_4 = arith.constant 0 : index
    %c0_5 = arith.constant 0 : index
    %5 = vector.load %arg4[%c0_4, %c0_5] : memref<128x128xbf16, #tpu.memory_space<vmem>>, vector<128x128xbf16>
    %cst = arith.constant dense<0.000000e+00> : vector<8x128xf32>
    %6 = tpu.matmul %4, %5, %cst {dimension_numbers = #tpu.dot_dimension_numbers<[1], [0], [0], [1], [0, 0, 1, 1], [], []>} : vector<8x128xbf16>, vector<128x128xbf16>, vector<8x128xf32> -> vector<8x128xf32>
    %7 = arith.addf %3, %6 : vector<8x128xf32>
    %c0_6 = arith.constant 0 : index
    %c0_7 = arith.constant 0 : index
    %8 = vector.load %arg9[%c0_6, %c0_7] : memref<8x128xf32, #tpu.memory_space<vmem>>, vector<8x128xf32>
    tpu.vector_store %arg9[%c0_6, %c0_7], %7 {strides = array<i32>} : memref<8x128xf32, #tpu.memory_space<vmem>>, vector<8x128xf32>,
    %c1_i32 = arith.constant 1 : i32
    %9 = arith.cmpi eq, %arg1, %c1_i32 : i32
    %10 = arith.extui %9 : i1 to i32
    %c0_i32_8 = arith.constant 0 : i32
    %11 = arith.cmpi ne, %10, %c0_i32_8 : i32
    scf.if %11 {
      %c0_9 = arith.constant 0 : index
      %c0_10 = arith.constant 0 : index
      %12 = vector.load %arg9[%c0_9, %c0_10] : memref<8x128xf32, #tpu.memory_space<vmem>>, vector<8x128xf32>
      %c0_11 = arith.constant 0 : index
      %c0_12 = arith.constant 0 : index
      %13 = vector.load %arg5[%c0_11, %c0_12] : memref<1x128xf32, #tpu.memory_space<vmem>>, vector<1x128xf32>
      %14 = vector.broadcast %13 : vector<1x128xf32> to vector<8x128xf32>
      %15 = arith.addf %12, %14 : vector<8x128xf32>
      %cst_13 = arith.constant 0.000000e+00 : f32
      %16 = vector.broadcast %cst_13 : f32 to vector<8x128xf32>
      %17 = arith.maximumf %15, %16 : vector<8x128xf32>
      %cst_14 = arith.constant dense<0.000000e+00> : vector<128xf32>
      %18 = vector.multi_reduction <add>, %17, %cst_14 [0] : vector<8x128xf32> to vector<128xf32>
      %19 = vector.shape_cast %18 : vector<128xf32> to vector<1x128xf32>
      %cst_15 = arith.constant 8.000000e+00 : f32
      %20 = vector.broadcast %cst_15 : f32 to vector<1x128xf32>
      %21 = arith.divf %19, %20 : vector<1x128xf32>
      %22 = vector.broadcast %21 : vector<1x128xf32> to vector<8x128xf32>
      %23 = arith.subf %17, %22 : vector<8x128xf32>
      %24 = arith.mulf %23, %23 : vector<8x128xf32>
      %cst_16 = arith.constant dense<0.000000e+00> : vector<128xf32>
      %25 = vector.multi_reduction <add>, %24, %cst_16 [0] : vector<8x128xf32> to vector<128xf32>
      %26 = vector.shape_cast %25 : vector<128xf32> to vector<1x128xf32>
      %cst_17 = arith.constant 8.000000e+00 : f32
      %27 = vector.broadcast %cst_17 : f32 to vector<1x128xf32>
      %28 = arith.divf %26, %27 : vector<1x128xf32>
      %cst_18 = arith.constant 9.99999974E-6 : f32
      %29 = vector.broadcast %cst_18 : f32 to vector<1x128xf32>
      %30 = arith.addf %28, %29 : vector<1x128xf32>
      %31 = math.rsqrt %30 : vector<1x128xf32>
      %c0_19 = arith.constant 0 : index
      %c0_20 = arith.constant 0 : index
      %32 = vector.load %arg6[%c0_19, %c0_20] : memref<1x128xf32, #tpu.memory_space<vmem>>, vector<1x128xf32>
      %33 = arith.mulf %32, %31 : vector<1x128xf32>
      %c0_21 = arith.constant 0 : index
      %c0_22 = arith.constant 0 : index
      %34 = vector.load %arg7[%c0_21, %c0_22] : memref<1x128xf32, #tpu.memory_space<vmem>>, vector<1x128xf32>
      %35 = arith.mulf %21, %33 : vector<1x128xf32>
      %36 = arith.subf %34, %35 : vector<1x128xf32>
      %cst_23 = arith.constant 1.250000e+00 : f32
      %37 = vector.broadcast %cst_23 : f32 to vector<1x128xf32>
      %38 = arith.mulf %33, %37 : vector<1x128xf32>
      %cst_24 = arith.constant 1.250000e+00 : f32
      %39 = vector.broadcast %cst_24 : f32 to vector<1x128xf32>
      %40 = arith.mulf %36, %39 : vector<1x128xf32>
      %41 = tpu.iota {dimensions = array<i32: 0>} : vector<8x128xi32>
      %42 = tpu.iota {dimensions = array<i32: 1>} : vector<8x128xi32>
      %c128_i32 = arith.constant 128 : i32
      %43 = arith.muli %arg0, %c128_i32 : i32
      %44 = vector.broadcast %43 : i32 to vector<8x128xi32>
      %45 = arith.addi %42, %44 : vector<8x128xi32>
      %c256_i32 = arith.constant 256 : i32
      %46 = vector.broadcast %c256_i32 : i32 to vector<8x128xi32>
      %47 = arith.muli %41, %46 : vector<8x128xi32>
      %48 = arith.addi %47, %45 : vector<8x128xi32>
      %c0_25 = arith.constant 0 : index
      %49 = memref.load %arg2[%c0_25] : memref<1xi32, #tpu.memory_space<smem>>
      %c-1640531527_i32 = arith.constant -1640531527 : i32
      %50 = arith.muli %49, %c-1640531527_i32 : i32
      %51 = vector.broadcast %50 : i32 to vector<8x128xi32>
      %52 = arith.xori %48, %51 : vector<8x128xi32>
      %c16_i32 = arith.constant 16 : i32
      %53 = vector.broadcast %c16_i32 : i32 to vector<8x128xi32>
      %54 = arith.shrui %52, %53 : vector<8x128xi32>
      %55 = arith.xori %52, %54 : vector<8x128xi32>
      %c2146121005_i32 = arith.constant 2146121005 : i32
      %56 = vector.broadcast %c2146121005_i32 : i32 to vector<8x128xi32>
      %57 = arith.muli %55, %56 : vector<8x128xi32>
      %c15_i32 = arith.constant 15 : i32
      %58 = vector.broadcast %c15_i32 : i32 to vector<8x128xi32>
      %59 = arith.shrui %57, %58 : vector<8x128xi32>
      %60 = arith.xori %57, %59 : vector<8x128xi32>
      %c-2073254261_i32 = arith.constant -2073254261 : i32
      %61 = vector.broadcast %c-2073254261_i32 : i32 to vector<8x128xi32>
      %62 = arith.muli %60, %61 : vector<8x128xi32>
      %c16_i32_26 = arith.constant 16 : i32
      %63 = vector.broadcast %c16_i32_26 : i32 to vector<8x128xi32>
      %64 = arith.shrui %62, %63 : vector<8x128xi32>
      %65 = arith.xori %62, %64 : vector<8x128xi32>
      %c858993459_i32 = arith.constant 858993459 : i32
      %66 = vector.broadcast %c858993459_i32 : i32 to vector<8x128xi32>
      %67 = arith.cmpi uge, %65, %66 : vector<8x128xi32>
      %68 = vector.broadcast %38 : vector<1x128xf32> to vector<8x128xf32>
      %69 = arith.mulf %17, %68 : vector<8x128xf32>
      %70 = vector.broadcast %40 : vector<1x128xf32> to vector<8x128xf32>
      %71 = arith.addf %69, %70 : vector<8x128xf32>
      %cst_27 = arith.constant 0.000000e+00 : f32
      %72 = vector.broadcast %cst_27 : f32 to vector<8x128xf32>
      %73 = arith.select %67, %71, %72 : vector<8x128xi1>, vector<8x128xf32>
      %c0_28 = arith.constant 0 : index
      %c0_29 = arith.constant 0 : index
      %74 = vector.load %arg8[%c0_28, %c0_29] : memref<8x128xf32, #tpu.memory_space<vmem>>, vector<8x128xf32>
      tpu.vector_store %arg8[%c0_28, %c0_29], %73 {strides = array<i32>} : memref<8x128xf32, #tpu.memory_space<vmem>>, vector<8x128xf32>,
    } else {
    }
    return
  }
  func.func @transform_0(%arg0: i32, %arg1: i32, %arg2: memref<1xi32, #tpu.memory_space<smem>>) -> (i32, i32) {
    %c0_i32 = arith.constant 0 : i32
    %c0_i32_0 = arith.constant 0 : i32
    return %c0_i32, %arg1 : i32, i32
  }
  func.func @transform_1(%arg0: i32, %arg1: i32, %arg2: memref<1xi32, #tpu.memory_space<smem>>) -> (i32, i32) {
    %c0_i32 = arith.constant 0 : i32
    return %arg1, %arg0 : i32, i32
  }
  func.func @transform_2(%arg0: i32, %arg1: i32, %arg2: memref<1xi32, #tpu.memory_space<smem>>) -> (i32, i32) {
    %c0_i32 = arith.constant 0 : i32
    %c0_i32_0 = arith.constant 0 : i32
    return %c0_i32, %arg0 : i32, i32
  }
  func.func @transform_3(%arg0: i32, %arg1: i32, %arg2: memref<1xi32, #tpu.memory_space<smem>>) -> (i32, i32) {
    %c0_i32 = arith.constant 0 : i32
    %c0_i32_0 = arith.constant 0 : i32
    return %c0_i32, %arg0 : i32, i32
  }
  func.func @transform_4(%arg0: i32, %arg1: i32, %arg2: memref<1xi32, #tpu.memory_space<smem>>) -> (i32, i32) {
    %c0_i32 = arith.constant 0 : i32
    %c0_i32_0 = arith.constant 0 : i32
    return %c0_i32, %arg0 : i32, i32
  }
  func.func @transform_5(%arg0: i32, %arg1: i32, %arg2: memref<1xi32, #tpu.memory_space<smem>>) -> (i32, i32) {
    %c0_i32 = arith.constant 0 : i32
    %c0_i32_0 = arith.constant 0 : i32
    return %c0_i32, %arg0 : i32, i32
  }
}

</mosaic_0001>

<bundles_post_ra>
// kernel: tpu_custom_call.1
= control target key start
LH: loop header
LB: loop body
LE: loop exit
PB: predicated region body
PF: predicated region fallthrough
CT: control target
= control target key end

     0   :  { %s1536_s0 = inlined_call_operand.<no memory space> [shape: s32[1], index: 0, kind: input, shape index: {}]   ;;  %s1537_s1 = inlined_call_operand.hbm [shape: bf16[8,256], index: 1, kind: input, shape index: {}]   ;;  %s1538_s2 = inlined_call_operand.hbm [shape: bf16[256,256], index: 2, kind: input, shape index: {}]   ;;  %s1539_s3 = inlined_call_operand.vmem [shape: f32[1,256], index: 3, kind: input, shape index: {}]   ;;  %s1540_s4 = inlined_call_operand.vmem [shape: f32[1,256], index: 4, kind: input, shape index: {}]   ;;  %s1541_s5 = inlined_call_operand.vmem [shape: f32[1,256], index: 5, kind: input, shape index: {}]   ;;  %s1542_s6 = inlined_call_operand.hbm [shape: f32[8,256], index: 6, kind: output, shape index: {}]  }
   0x1   :  { %1553 = sst [smem:[#allocation23_spill]] %s1537_s1 }
   0x2   :  { %11 = sst [smem:[#allocation4]] %s1536_s0 }
   0x3   :  { %12 = vsyncpa [#allocation6], 0 }
   0x4   :  { %14 = vsyncpa [#allocation6 + $0x1], 0 }
   0x5   :  { %15 = vsyncpa [#allocation9], 0 }
   0x6   :  { %17 = vsyncpa [#allocation9 + $0x1], 0 }
   0x7   :  { %18 = vsyncpa [#allocation7], 0 }
   0x8   :  { %20 = vsyncpa [#allocation7 + $0x1], 0  ;;  %s1146_s23 = smov 0   ;;  %s1148_s24 = smov 0  }
   0x9   :  { %s1150_s25 = smov 0   ;;  %s1152_s26 = smov 0  }
   0xa   :  { %s1154_s27 = smov 0   ;;  %s1156_s28 = smov 0  }
   0xb   :  { %s1158_s29 = smov 0   ;;  %s1160_s0 = smov 0  }
   0xc   :  { %s1162_s30 = smov 0   ;;  %s1164_s7 = smov 0  }
   0xd   :  { %s1166_s8 = smov 0   ;;  %s1168_s9 = smov 0  }
   0xe   :  { %s1170_s10 = smov 0   ;;  %s1172_s11 = smov 0  }
   0xf LB: > { %1554 = sst [smem:[#allocation14_spill]] %s1045_s23  ;;  %s1543_s12 = sadd.s32 4294967295, %s1097_s11   ;;  %s1097_s11 = sphi %s1172_s11, %s26_s11   ;;  %s1093_s10 = sphi %s1170_s10, %s1591_s10   ;;  %s1089_s9 = sphi %s1168_s9, %s1600_s9   ;;  %s1085_s8 = sphi %s1166_s8, %s1589_s8   ;;  %s1081_s7 = sphi %s1164_s7, %s1599_s7   ;;  %s1077_s30 = sphi %s1162_s30, %s1588_s30   ;;  %s1073_s0 = sphi %s1160_s0, %s1598_s0   ;;  %s1069_s29 = sphi %s1158_s29, %s1597_s29   ;;  %s1065_s28 = sphi %s1156_s28, %s1596_s28   ;;  %s1061_s27 = sphi %s1154_s27, %s1595_s27   ;;  %s1057_s26 = sphi %s1152_s26, %s1594_s26   ;;  %s1053_s25 = sphi %s1150_s25, %s1585_s25   ;;  %s1049_s24 = sphi %s1148_s24, %s1593_s24   ;;  %s1045_s23 = sphi %s1146_s23, %s1592_s23  }
  0x10   : > { %1555 = sst [smem:[#allocation15_spill]] %s1053_s25  ;;  %s35_s14 = sadd.s32 1, %s1089_s9 }
  0x11   : > { %1556 = sst [smem:[#allocation16_spill]] %s1077_s30  ;;  %s38_s15 = sadd.s32 1, %s1093_s10 }
  0x12   : > { %1557 = sst [smem:[#allocation17_spill]] %s1093_s10  ;;  %p36_p0 = scmp.ge.s32.totalorder %s35_s14, 2 }
  0x13   : > { %s45_s16 = sadd.s32 1, %s1077_s30  ;;  %p52_p1 = scmp.ne.s32.totalorder %s1077_s30, %s1073_s0 }
  0x14   : > { %p53_p2 = scmp.eq.s32.totalorder %s1097_s11, 0  ;;  %s1602_s14 = smov (%p36_p0, %s35_s14), 0 }
  0x15   : > { %1558 = sst [smem:[#allocation18_spill]] %s1602_s14  ;;  %s1604_s15 = smov (!%p36_p0, %s38_s15), %s1093_s10 }
  0x16   : > { %s42_s17 = ssub.s32 %s1089_s9, %s1602_s14  ;;  %p1229_p3 = por %p53_p2, %p52_p1 }
  0x17   : > { %p40_p4 = scmp.ge.s32.totalorder %s1604_s15, 2  ;;  %p43_p5 = scmp.eq.s32.totalorder %s42_s17, 0 }
  0x18   : > { %p58_p6 = scmp.ne.s32.totalorder %s1073_s0, %s1069_s29  ;;  %p1236_p7 = scmp.eq.s32.totalorder %s1543_s12, 0 }
  0x19   : > { %s1606_s15 = smov (%p40_p4, %s1604_s15), 0  ;;  %s73_s13 = sadd.s32 1, %s1065_s28 }
  0x1a   : > { %1561 = sst [smem:[#allocation19_spill]] %s1606_s15  ;;  %p1247_p8 = por %p1236_p7, %p58_p6 }
  0x1b   : > { %s1243_s20 = scalar_select %p43_p5, %s1077_s30, %s45_s16  }
  0x1c   : > { %s1563_s21 = scalar_select %p1247_p8, 1, 0 }
  0x1d   : > { %1562 = sst [smem:[#allocation20_spill]] %s1243_s20  ;;  %s69_s22 = ssub.s32 %s1093_s10, %s1606_s15 }
  0x1e   : > { %s70_s29 = sor.u32 %s69_s22, %s42_s17  ;;  %p80_p10 = scmp.ne.s32.totalorder %s1065_s28, %s1061_s27 }
  0x1f   : > { %p71_p9 = scmp.eq.s32.totalorder %s70_s29, 0  ;;  %p86_p11 = scmp.ne.s32.totalorder %s1061_s27, %s1057_s26 }
  0x20   : > { %p175_p12 = scmp.eq.s32.totalorder %s69_s22, 0  ;;  %p1263_p13 = por %p80_p10, %p53_p2 }
  0x21   : > { %s1259_s16 = scalar_select %p71_p9, %s1065_s28, %s73_s13  }
  0x22   : > { %p1269_p0 = por %p86_p11, %p1236_p7  ;;  %s177_s17 = sadd.s32 1, %s1053_s25 }
  0x23   : > { %1564 = sst [smem:[#allocation21_spill]] %s1259_s16  ;;  %p187_p1 = scmp.ne.s32.totalorder %s1053_s25, %s1049_s24 }
  0x24   : > { %s1566_s14 = scalar_select %p1269_p0, 1, 0 }
  0x25   : > { %s1277_s29 = scalar_select %p175_p12, %s1053_s25, %s177_s17  }
  0x26   : > { %s1568_s26 = sadd.s32 4294967295, %s1097_s11   ;;  %p193_p5 = scmp.ne.s32.totalorder %s1049_s24, %s1045_s23 }
  0x27   : > { %1567 = sst [smem:[#allocation22_spill]] %s1277_s29  ;;  %p188_p4 = scmp.eq.s32.totalorder %s1568_s26, 3 }
  0x28   : > { %s1569_s13 = sadd.s32 4294967294, %s1097_s11   ;;  %p757_p7 = scmp.lt.s32.totalorder %s1097_s11, 4 }
  0x29   : > { %p194_p2 = scmp.eq.s32.totalorder %s1569_s13, 3  ;;  %p1285_p6 = por %p188_p4, %p187_p1 }
  0x2a   : > { %s214_s15 = sand.u32 1, %s1077_s30   ;;  %s685_s17 = sshll.u32 %s1089_s9, 6 }
  0x2b   : > { %s1570_s22 = scalar_select %p1285_p6, 1, 0 }
  0x2c   : > { %p1290_p9 = por %p194_p2, %p193_p5  ;;  %s684_s20 = sshll.u32 %s214_s15, 2 }
  0x2d   : > { %s1572_s1 = sld [smem:[#allocation23_spill]]  ;;  %s218_s13 = scalar_lea.vmem [#allocation5], %s684_s20 }
  0x2e   : > { %s1571_s19 = scalar_select %p1290_p9, 1, 0 }
  0x2f   : > { %s225_s25 = sshll.u32 %s218_s13, 4  ;;  %p1305_p10 = pnand %p757_p7, %p1229_p3  ;;  %s1301_s25 = int_to_ptr.vmem [resolvable:$true] %s225_s25 }
  0x30   : > { %p1312_p11 = pnand %p757_p7, %p1263_p13  ;;  %s215_s29 = scalar_lea.sflag [#allocation6], %s214_s15 }
  0x31   : > { %p889_p4 = pneg %p1305_p10 }
  0x33   : > { %s1299_s26 = scalar_lea.hbm %s1572_s1, %s685_s17  ;;  %s892_s13 = scalar_lea.hbm %s1572_s1, 128 }
  0x34   : > { %s887_s20 = scalar_lea.hbm %s1299_s26, 64  ;;  %p893_p13 = scmp.lt.u32.totalorder %s1299_s26, %s1572_s1 }
  0x35   : > { %p888_p1 = scmp.ne.s32.totalorder %s1299_s26, %s887_s20  ;;  %p894_p2 = scmp.lt.u32.totalorder %s892_s13, %s887_s20 }
  0x36   : > { %p896_p12 = scmp.lt.u32.totalorder %s887_s20, %s1299_s26 }
  0x37   : > { %p890_p3 = pnand %p889_p4, %p888_p1  ;;  %p895_p7 = por %p894_p2, %p893_p13 }
  0x39   : > { %p891_p5 = pneg %p890_p3  ;;  %p897_p9 = por %p896_p12, %p895_p7 }
  0x3b   : > { %p898_p6 = pnand %p897_p9, %p891_p5 }
  0x3d   : > { %901 = shalt.err (!%p898_p6)
}
  0x3e   : > { %s902_s15 = scalar_lea.vmem %s1301_s25, 64  ;;  %s1099_s18 = smov [#allocation5]  }
  0x3f   : > { %p903_p1 = scmp.ne.s32.totalorder %s1301_s25, %s902_s15  ;;  %s907_s17 = sshll.u32 %s1099_s18, 4  ;;  %s908_s17 = int_to_ptr.vmem [resolvable:$false] %s907_s17 }
  0x40   : > { %s909_s30 = scalar_lea.vmem %s908_s17, 128  ;;  %p910_p8 = scmp.lt.s32.totalorder %s1301_s25, %s908_s17 }
  0x41   : > { %p905_p3 = pnand %p903_p1, %p889_p4  ;;  %p911_p13 = scmp.lt.s32.totalorder %s909_s30, %s902_s15 }
  0x43   : > { %p906_p0 = pneg %p905_p3  ;;  %p912_p2 = por %p911_p13, %p910_p8 }
  0x45   : > { %p913_p12 = pnand %p912_p2, %p906_p0 }
  0x47   : > { %916 = shalt.err (!%p913_p12)
}
  0x48   : > { %749 = dma.hbm_to_vmem [thread:$0]  (!%p1305_p10), %s1299_s26, 64, %s1301_s25, %s215_s29  }
  0x49   : > { %p271_p6 = scmp.lt.s32.totalorder %s1097_s11, 5  ;;  %s232_s20 = sand.u32 1, %s1065_s28  }
  0x4a   : > { %s1575_s13 = sshll.u32 %s1089_s9, 5  ;;  %p1576_p9 = scmp.ge.s32.totalorder %s1097_s11, 1 }
  0x4b   : > { %s242_s12 = sadd.s32 %s1093_s10, %s1575_s13  ;;  %s686_s23 = sshll.u32 %s232_s20, 6 }
  0x4c   : > { %p1349_p8 = pnand %p1576_p9, %p271_p6  ;;  %s689_s18 = sshll.u32 %s242_s12, 6 }
  0x4d   : > { %s1356_s1 = scalar_lea.hbm %s1538_s2, %s689_s18  ;;  %s236_s25 = scalar_lea.vmem [#allocation8], %s686_s23 }
  0x4e   : > { %s245_s26 = sshll.u32 %s236_s25, 4  ;;  %s1360_s29 = scalar_lea.sflag [#allocation9], %s232_s20  ;;  %s1358_s26 = int_to_ptr.vmem [resolvable:$true] %s245_s26 }
  0x4f   : > { %s917_s13 = scalar_lea.hbm %s1356_s1, 1024  ;;  %p919_p10 = pneg %p1312_p11 }
  0x50   : > { %p918_p0 = scmp.ne.s32.totalorder %s1356_s1, %s917_s13  ;;  %s922_s17 = scalar_lea.hbm %s1538_s2, 4096 }
  0x51   : > { %p923_p7 = scmp.lt.u32.totalorder %s1356_s1, %s1538_s2  ;;  %p924_p1 = scmp.lt.u32.totalorder %s922_s17, %s917_s13 }
  0x52   : > { %p920_p4 = pnand %p919_p10, %p918_p0  ;;  %p926_p13 = scmp.lt.u32.totalorder %s917_s13, %s1356_s1 }
  0x53   : > { %p925_p3 = por %p924_p1, %p923_p7 }
  0x54   : > { %p921_p5 = pneg %p920_p4 }
  0x55   : > { %p927_p2 = por %p926_p13, %p925_p3 }
  0x57   : > { %p928_p12 = pnand %p927_p2, %p921_p5 }
  0x59   : > { %931 = shalt.err (!%p928_p12)
}
  0x5a   : > { %s932_s20 = scalar_lea.vmem %s1358_s26, 1024  ;;  %s1100_s23 = smov [#allocation8]  }
  0x5b   : > { %p933_p6 = scmp.ne.s32.totalorder %s1358_s26, %s932_s20  ;;  %s937_s25 = sshll.u32 %s1100_s23, 4  ;;  %s938_s25 = int_to_ptr.vmem [resolvable:$false] %s937_s25 }
  0x5c   : > { %s939_s10 = scalar_lea.vmem %s938_s25, 2048  ;;  %p940_p4 = scmp.lt.s32.totalorder %s1358_s26, %s938_s25 }
  0x5d   : > { %p935_p9 = pnand %p933_p6, %p919_p10  ;;  %p941_p7 = scmp.lt.s32.totalorder %s939_s10, %s932_s20 }
  0x5f   : > { %p936_p0 = pneg %p935_p9  ;;  %p942_p1 = por %p941_p7, %p940_p4 }
  0x61   : > { %p943_p3 = pnand %p942_p1, %p936_p0 }
  0x63   : > { %946 = shalt.err (!%p943_p3)
}
  0x64   : > { %s1101_s13 = smov 128   ;;  %s1102_s12 = smov 64  }
  0x65   : > { %s1103_s18 = smov 4   ;;  %275 = sbr.rel (%p1349_p8) target bundleno = 466 (0x1d2), region = 40 }
  0x66   : > { %752 = dma.hbm_to_vmem [thread:$0]  (!%p1312_p11), %s1356_s1, 1024, %s1358_s26, %s1360_s29, %s1101_s13, %s1102_s12, %s1103_s18  }
  0x67   : > { %s277_s17 = sand.u32 (!%p1349_p8), 1, %s1073_s0   ;;  %p1578_p10 = scmp.ne.s32.totalorder (!%p1349_p8), %s1563_s21, 0 }
  0x68   : > { %s1391_s30 = sshll.u32 (!%p1349_p8), %s277_s17, 2  ;;  %s278_s20 = scalar_lea.sflag (!%p1349_p8), [#allocation6], %s277_s17 }
  0x69   : > { %s281_s23 = scalar_lea.vmem (!%p1349_p8), [#allocation5], %s1391_s30 }
  0x6c   : > { %1032 = dma.done.wait (%p1578_p10), %s278_s20, 64  }
  0x6d   : > { %1034 = vsyncadd (%p1578_p10), %s278_s20, 4294967232  ;;  %s286_s16 = sand.u32 1, %s1061_s27   ;;  %p1579_p11 = scmp.ne.s32.totalorder %s1566_s14, 0 }
  0x6e   : > { %s692_s1 = sshll.u32 %s286_s16, 6  ;;  %s287_s26 = scalar_lea.sflag [#allocation9], %s286_s16 }
  0x6f   : > { %s1399_s15 = scalar_lea.vmem [#allocation8], %s692_s1 }
  0x70   : > { %1036 = dma.done.wait (%p1579_p11), %s287_s26, 1024  }
  0x71   : > { %1038 = vsyncadd (%p1579_p11), %s287_s26, 4294966272  ;;  %s328_s29 = sand.u32 1, %s1049_s24   ;;  %p332_p8 = scmp.lt.s32.totalorder %s1085_s8, 1 }
  0x72   : > { %s1409_s21 = sshll.u32 %s328_s29, 3  ;;  %p694_p5 = scmp.ne.s32.totalorder %s1081_s7, 0 }
  0x73   : > { %s1412_s25 = scalar_select %p332_p8, %s1085_s8, 1 }
  0x74   : > { %s330_s26 = scalar_lea.vmem [#allocation10], %s1409_s21  ;;  %345 = sbr.rel (%p694_p5) target bundleno = 123 (0x7b), region = 52  ;;  %v1104_v0 = vmov (!%p694_p5), 0.0  }
  0x75   : > { %s334_s14 = scalar_lea.vmem %s1539_s3, %s1412_s25  ;;  %s337_s17 = scalar_lea.vmem %s1540_s4, %s1412_s25  ;;  %346 = vst [vmem:[#allocation2] sm:$0xff] (!%p694_p5), %v1104_v0 }
  0x76   : > { %s340_s1 = scalar_lea.vmem %s1541_s5, %s1412_s25 }
  0x7b PF: > { %v877_v1 = vld [vmem:[%s1399_s15] sm:$0xff]   ;;  %v1105_v2 = vmov 0.0   ;;  %v878_v3 = vld [vmem:[%s1399_s15 + $0x8] sm:$0xff]   ;;  %vm1106_vm0 = vmmov 0   ;;  %v879_v4 = vld [vmem:[%s1399_s15 + $0x10] sm:$0xff]   ;;  %p703_p13 = scmp.ne.s32.totalorder %s1081_s7, 1 }
  0x7c   : > { %720 = vmatprep.subr.bf16.mxu0 %v1105_v2  ;;  %736 = vmatprep.mubr.msk.bf16.mxu0 %vm1106_vm0, %v1105_v2  ;;  %v880_v5 = vld [vmem:[%s1399_s15 + $0x18] sm:$0xff]   ;;  %v881_v6 = vld [vmem:[%s1399_s15 + $0x20] sm:$0xff]   ;;  %v882_v7 = vld [vmem:[%s1399_s15 + $0x28] sm:$0xff]   ;;  %v495_v23 = vlaneseq (!%p703_p13)  ;;  %s504_s30 = sld [smem:[#allocation4]] (!%p703_p13) }
  0x7d   : > { %721 = vmatpush3.bf16.msra.mxu0 %v877_v1  ;;  %v883_v8 = vld [vmem:[%s1399_s15 + $0x30] sm:$0xff]   ;;  %v884_v9 = vld [vmem:[%s1399_s15 + $0x38] sm:$0xff]  }
  0x7e   : > { %722 = vmatprep.subr.bf16.mxu0 %v1105_v2  ;;  %v348_v10 = vld [vmem:[%s281_s23] sm:$0xf]  ;;  %v347_v11 = vld [vmem:[#allocation2] sm:$0xff]  ;;  %s705_s23 = sshll.u32 (!%p703_p13), %s1085_s8, 7  ;;  %v496_v26 = vshrl.u32 (!%p703_p13), %v495_v23, 7  ;;  %v498_v27 = vand.u32 (!%p703_p13), 127, %v495_v23 }
  0x7f   : > { %v704_v18 = vld [vmem:[%s334_s14] ss:$0 sm:$0xff] (!%p703_p13)  ;;  %v500_v28 = vstv (!%p703_p13), %s705_s23 }
  0x80   : > { %v501_v31 = vadd.s32 (!%p703_p13), %v500_v28, %v498_v27  ;;  %v502_v32 = vmul.u32 (!%p703_p13), 256, %v496_v26  ;;  %v488_v52 = vld [vmem:[%s337_s17] sm:$0x1] (!%p703_p13)  ;;  %v520_v56 = vsub.s32 (!%p703_p13), 0, %v496_v26 }
  0x81   : > { %723 = vmatpush3.bf16.msra.mxu0 %v878_v3  ;;  %v490_v57 = vld [vmem:[%s340_s1] sm:$0x1] (!%p703_p13) }
  0x82   : > { %724 = vmatprep.subr.bf16.mxu0 %v1105_v2  ;;  %s505_s7 = smul.u32 (!%p703_p13), 2654435769, %s504_s30  ;;  %v503_v35 = vadd.s32 (!%p703_p13), %v502_v32, %v501_v31 }
  0x84   : > { %v506_v36 = vstv (!%p703_p13), %s505_s7 }
  0x85   : > { %725 = vmatpush3.bf16.msra.mxu0 %v879_v4  ;;  %v507_v39 = vxor.u32 (!%p703_p13), %v506_v36, %v503_v35 }
  0x86   : > { %726 = vmatprep.subr.bf16.mxu0 %v1105_v2 }
  0x87   : > { %v508_v42 = vshrl.u32 (!%p703_p13), %v507_v39, 16 }
  0x89   : > { %727 = vmatpush3.bf16.msra.mxu0 %v880_v5  ;;  %v509_v45 = vxor.u32 (!%p703_p13), %v508_v42, %v507_v39 }
  0x8a   : > { %728 = vmatprep.subr.bf16.mxu0 %v1105_v2 }
  0x8b   : > { %v510_v48 = vmul.u32 (!%p703_p13), 2146121005, %v509_v45 }
  0x8d   : > { %729 = vmatpush3.bf16.msra.mxu0 %v881_v6  ;;  %v511_v50 = vshrl.u32 (!%p703_p13), %v510_v48, 15 }
  0x8e   : > { %730 = vmatprep.subr.bf16.mxu0 %v1105_v2 }
  0x8f   : > { %v512_v51 = vxor.u32 (!%p703_p13), %v511_v50, %v510_v48 }
  0x91   : > { %731 = vmatpush3.bf16.msra.mxu0 %v882_v7  ;;  %v513_v53 = vmul.u32 (!%p703_p13), 2221713035, %v512_v51 }
  0x92   : > { %732 = vmatprep.subr.bf16.mxu0 %v1105_v2 }
  0x93   : > { %v514_v58 = vshrl.u32 (!%p703_p13), %v513_v53, 16 }
  0x95   : > { %733 = vmatpush3.bf16.msra.mxu0 %v883_v8  ;;  %v515_v63 = vxor.u32 (!%p703_p13), %v514_v58, %v513_v53 }
  0x96   : > { %734 = vmatprep.subr.bf16.mxu0 %v1105_v2 }
  0x97   : > { %vm516_vm1 = vcmp.ge.u32.totalorder (!%p703_p13), %v515_v63, 858993459 }
  0x99   : > { %735 = vmatpush3.bf16.msra.mxu0 %v884_v9 }
  0x9c   : > { %737 = vmatmul.mubr.bf16.vlgmr.msra.gmra.mrb[0].mxu0 %v348_v10 }
 0x16c   : > { %458 = sbr.rel (%p703_p13) target bundleno = 441 (0x1b9), region = 56 }
 0x16f   : > { %v447_v12 = vpop.f32.mrb[0].mxu0 }
 0x170   : > { %v453_v13 = vadd.f32 %v447_v12, %v347_v11  ;;  %v738_v14 = vpop.f32.mrb[1].mxu0 }
 0x171   : > { %v450_v15 = vpop.f32.mrb[2].mxu0 }
 0x172   : > { %454 = vst [vmem:[#allocation2] sm:$0xff] %v453_v13  ;;  %v739_v16 = vpop.f32.mrb[3].mxu0 }
 0x179   : > { %v459_v17 = vld [vmem:[#allocation2] sm:$0xff] }
 0x17a   : > { %v467_v19 = vadd.f32 %v704_v18, %v459_v17 }
 0x17c   : > { %v468_v20 = vmax.f32 %v467_v19, 0.0 }
 0x17e   : > { %v469_v21 = vrot.slane %v468_v20, 4 }
 0x180   : > { %v470_v22 = vadd.f32 %v469_v21, %v468_v20 }
 0x182   : > { %v471_v24 = vrot.slane %v470_v22, 2 }
 0x184   : > { %v472_v25 = vadd.f32 %v471_v24, %v470_v22 }
 0x186   : > { %v473_v29 = vrot.slane %v472_v25, 1 }
 0x188   : > { %v474_v30 = vadd.f32 %v473_v29, %v472_v25 }
 0x18a   : > { %v476_v33 = vmul.f32 0.125, %v474_v30 }
 0x18c   : > { %v477_v34 = vsub.f32 %v468_v20, %v476_v33 }
 0x18e   : > { %v478_v37 = vmul.f32 %v477_v34, %v477_v34 }
 0x190   : > { %v479_v38 = vrot.slane %v478_v37, 4 }
 0x192   : > { %v480_v40 = vadd.f32 %v479_v38, %v478_v37 }
 0x194   : > { %v481_v41 = vrot.slane %v480_v40, 2 }
 0x196   : > { %v482_v43 = vadd.f32 %v481_v41, %v480_v40 }
 0x198   : > { %v483_v44 = vrot.slane %v482_v43, 1 }
 0x19a   : > { %v484_v46 = vadd.f32 %v483_v44, %v482_v43 }
 0x19c   : > { %v485_v47 = vmul.f32 0.125, %v484_v46 }
 0x19e   : > { %v486_v49 = vadd.f32 1e-05, %v485_v47 }
 0x1a0   : > { %885 = vrsqrt.f32 %v486_v49 }
 0x1aa   : > { %v886_v54 = vpop.eup %885 }
 0x1ab   : > { %v489_v55 = vmul.f32 %v886_v54, %v488_v52 }
 0x1ad   : > { %v491_v59 = vmul.f32 %v489_v55, %v476_v33  ;;  %v493_v60 = vmul.f32 1.25, %v489_v55 }
 0x1af   : > { %v492_v61 = vsub.f32 %v490_v57, %v491_v59  ;;  %v521_v62 = vrot.slane %v493_v60, %v520_v56 }
 0x1b1   : > { %v494_v0 = vmul.f32 1.25, %v492_v61  ;;  %v523_v1 = vmul.f32 %v521_v62, %v468_v20 }
 0x1b3   : > { %v528_v2 = vrot.slane %v494_v0, %v520_v56 }
 0x1b5   : > { %v530_v3 = vadd.f32 %v528_v2, %v523_v1 }
 0x1b7   : > { %v531_v4 = vsel %vm516_vm1, %v530_v3, 0.0 }
 0x1b8   : > { %532 = vst [vmem:[%s330_s26] sm:$0xff] %v531_v4 }
 0x1b9 PF: > { %s707_s25 = sshll.u32 %s1085_s8, 7  ;;  %s547_s1 = sshll.u32 %s330_s26, 4  ;;  %s548_s1 = int_to_ptr.vmem [resolvable:$true] %s547_s1 }
 0x1ba   : > { %s1461_s16 = scalar_lea.hbm %s1542_s6, %s707_s25  ;;  %s534_s10 = scalar_lea.sflag [#allocation7], %s328_s29 }
 0x1bb   : > { %s947_s13 = scalar_lea.vmem %s548_s1, 128  ;;  %p1580_p12 = scmp.ne.s32.totalorder %s1570_s22, 0 }
 0x1bc   : > { %p948_p2 = scmp.ne.s32.totalorder %s548_s1, %s947_s13  ;;  %s1107_s30 = smov [#allocation10]  }
 0x1bd   : > { %s951_s23 = sshll.u32 %s1107_s30, 4  ;;  %s952_s23 = int_to_ptr.vmem [resolvable:$false] %s951_s23 }
 0x1be   : > { %p949_p6 = pnand %p948_p2, %p1580_p12  ;;  %s953_s7 = scalar_lea.vmem %s952_s23, 256 }
 0x1bf   : > { %p954_p0 = scmp.lt.s32.totalorder %s548_s1, %s952_s23  ;;  %p955_p4 = scmp.lt.s32.totalorder %s953_s7, %s947_s13 }
 0x1c0   : > { %p950_p9 = pneg %p949_p6 }
 0x1c1   : > { %p956_p7 = por %p955_p4, %p954_p0 }
 0x1c3   : > { %p957_p1 = pnand %p956_p7, %p950_p9 }
 0x1c5   : > { %960 = shalt.err (!%p957_p1)
}
 0x1c6   : > { %s961_s8 = scalar_lea.hbm %s1461_s16, 128  ;;  %s965_s26 = scalar_lea.hbm %s1542_s6, 256 }
 0x1c7   : > { %p962_p3 = scmp.ne.s32.totalorder %s1461_s16, %s961_s8  ;;  %p966_p8 = scmp.lt.u32.totalorder %s1461_s16, %s1542_s6 }
 0x1c8   : > { %p967_p5 = scmp.lt.u32.totalorder %s965_s26, %s961_s8  ;;  %p969_p2 = scmp.lt.u32.totalorder %s961_s8, %s1461_s16 }
 0x1c9   : > { %p963_p10 = pnand %p962_p3, %p1580_p12 }
 0x1ca   : > { %p968_p13 = por %p967_p5, %p966_p8 }
 0x1cb   : > { %p964_p11 = pneg %p963_p10 }
 0x1cc   : > { %p970_p6 = por %p969_p2, %p968_p13 }
 0x1ce   : > { %p971_p9 = pnand %p970_p6, %p964_p11 }
 0x1d0   : > { %974 = shalt.err (!%p971_p9)
}
 0x1d1   : > { %744 = dma.vmem_to_hbm [thread:$0]  (%p1580_p12), %s548_s1, 128, %s1461_s16, %s534_s10  }
 0x1d2 PF: > { %s1581_s12 = sld [smem:[#allocation14_spill]]  ;;  %p758_p0 = scmp.ge.s32.totalorder %s1097_s11, 2 }
 0x1d3   : > { %p1582_p4 = scmp.ne.s32.totalorder %s1571_s19, 0 }
 0x1d5   : > { %p754_p7 = pnand %p758_p0, %p1582_p4 }
 0x1d8   : > { %s559_s18 = sand.u32 1, %s1581_s12  }
 0x1d9   : > { %s560_s25 = scalar_lea.sflag [#allocation7], %s559_s18 }
 0x1da   : > { %1040 = dma.done.wait (!%p754_p7), %s560_s25, 128  }
 0x1db   : > { %1042 = vsyncadd (!%p754_p7), %s560_s25, 4294967168  ;;  %s26_s11 = sadd.s32 1, %s1097_s11   ;;  %s1584_s22 = sld [smem:[#allocation15_spill]] }
 0x1dc   : > { %p1489_p1 = scmp.ge.s32.totalorder %s26_s11, 6   ;;  %s1585_s25 = sld [smem:[#allocation22_spill]] }
 0x1dd   : > { %s1586_s20 = sld [smem:[#allocation21_spill]]  ;;  %s1587_s16 = sld [smem:[#allocation16_spill]] }
 0x1de   : > { %s1588_s30 = sld [smem:[#allocation20_spill]]  ;;  %s1589_s8 = sld [smem:[#allocation17_spill]] }
 0x1df   : > { %s1590_s19 = sld [smem:[#allocation18_spill]]  ;;  %s1591_s10 = sld [smem:[#allocation19_spill]] }
 0x1e0   : > { %s1592_s23 = smov %s1049_s24  ;;  %s1594_s26 = smov %s1061_s27 }
 0x1e1   : > { %s1593_s24 = smov %s1584_s22  ;;  %s1595_s27 = smov %s1065_s28 }
 0x1e2   : > { %s1597_s29 = smov %s1073_s0  ;;  %s1599_s7 = smov %s1089_s9 }
 0x1e3   : > { %s1596_s28 = smov %s1586_s20  ;;  %s1598_s0 = smov %s1587_s16 }
 0x1e4   :  { %25 = sbr.rel (!%p1489_p1) target bundleno = 15 (0xf), region = 115 }
 0x1e5   : > { %s1600_s9 = smov %s1590_s19 }
 0x1eb   :  { %565 = vsyncpa [#allocation6], 1 }
 0x1ec   :  { %567 = vsyncpa [#allocation6 + $0x1], 1 }
 0x1ed   :  { %568 = vsyncpa [#allocation9], 1 }
 0x1ee   :  { %570 = vsyncpa [#allocation9 + $0x1], 1 }
 0x1ef   :  { %571 = vsyncpa [#allocation7], 1 }
 0x1f0   :  { %573 = vsyncpa [#allocation7 + $0x1], 1 }

</bundles_post_ra>
